<compile_context>
chip_gen: v7x
topology: tpu7x:2x2x1
jax: 0.10.0
libtpu: 0.0.40
codegen_flags: <defaults>
</compile_context>

<pallas_src>
import numpy as np

import jax
import jax.numpy as jnp
from jax.experimental import pallas as pl
from jax.experimental.pallas import tpu as pltpu

BETA_MIN = 0.1
BETA_MAX = 20.0


# ----------------------------------------------------------------------------
# Time-grid construction (mirror of ODE.get_ts) -- host-side, Python floats.
# ----------------------------------------------------------------------------
def get_ts(t_start, t_end, steps, dt):
    t_end = max(1e-5, float(t_end))
    if steps > 2:
        return [float(t_start) - t * float(dt) for t in range(steps - 1)] + [t_end]
    return [float(t_start), t_end]


# ----------------------------------------------------------------------------
# Pallas kernel: one streaming pass.  Per-batch channel mix along sublanes,
# pixels on lanes.  One (R, R) @ (R, tile_p) matmul per tile; memory-bound.
# ----------------------------------------------------------------------------
def _ode_mix_kernel(bd_ref, x_ref, o_ref):
    o_ref[...] = jnp.dot(
        bd_ref[...], x_ref[...], preferred_element_type=jnp.float32
    ).astype(o_ref.dtype)


def _plan_tiling(hw, rows, target_bytes=4 << 20):
    """Pick (tile_p, hw_pad).

    tile_p  : lane-tile width, multiple of 128, ~target_bytes per block,
              capped so the grid has >= 2 steps whenever the (128-padded)
              lane extent allows (keeps both v7x TensorCores busy).
    hw_pad  : lane extent padded to a multiple of 128 and then of tile_p,
              so every block is full-size (no full-extent fallback, no
              degenerate shrink, no masked partial stores).
    """
    hw128 = ((hw + 127) // 128) * 128
    lanes = (target_bytes // (rows * 4)) // 128 * 128
    lanes = max(128, min(hw128, lanes))
    if hw128 >= 256:  # ensure at least 2 grid steps when possible (v7x: 2 TCs)
        lanes = max(128, min(lanes, (hw128 // 2) // 128 * 128))
    hw_pad = ((hw128 + lanes - 1) // lanes) * lanes
    return lanes, hw_pad


def ode_solve(x_nchw, t_start, t_end, steps, dt, w):
    """Euler-integrate the probability-flow ODE over the get_ts() grid.

    x_nchw : (B, C, H, W)  -- PyTorch NCHW convention (kept; only reshaped).
    w      : (C, C) synthetic linear score weights.
    Note: if x is bf16 the in-kernel dot promotes against the f32 mix and
    casts back, so results differ slightly from a step-wise bf16 reference.
    """
    B, C, H, W = x_nchw.shape
    HW = H * W
    R = B * C

    # ---- host side: time grid (python floats) -> collapsed channel mix ----
    ts = get_ts(t_start, t_end, steps, dt)
    w64 = np.asarray(w, dtype=np.float64)
    eye = np.eye(C, dtype=np.float64)
    m_total = eye
    for k in range(len(ts) - 1):
        t_k = ts[k]
        dt_k = ts[k + 1] - ts[k]
        beta_k = BETA_MIN + t_k * (BETA_MAX - BETA_MIN)
        a_k = -0.5 * dt_k * beta_k                      # x <- (1+a)x + a*(x@W)
        m_total = m_total @ ((1.0 + a_k) * eye + a_k * w64)
    # Block-diagonal per-batch mix so that  out2d = BD @ x2d  on the
    # (B*C, H*W) layout:  BD = kron(I_B, M_total^T).  Fine while R is tiny.
    bd = jnp.asarray(np.kron(np.eye(B), m_total.T), dtype=jnp.float32)

    # ---- lane-dense layout: contiguous reshape + (optional) lane padding ----
    x2d = x_nchw.reshape(R, HW)
    tile_p, hw_pad = _plan_tiling(HW, R)
    if hw_pad != HW:
        x2d = jnp.pad(x2d, ((0, 0), (0, hw_pad - HW)))
    grid = (hw_pad // tile_p,)

    out2d = pl.pallas_call(
        _ode_mix_kernel,
        out_shape=jax.ShapeDtypeStruct((R, hw_pad), x2d.dtype),
        grid_spec=pltpu.PrefetchScalarGridSpec(
            num_scalar_prefetch=0,
            grid=grid,
            in_specs=[
                pl.BlockSpec((R, R), lambda i: (0, 0)),       # mix matrix, resident
                pl.BlockSpec((R, tile_p), lambda i: (0, i)),  # x lane tile
            ],
            out_specs=pl.BlockSpec((R, tile_p), lambda i: (0, i)),
        ),
        compiler_params=pltpu.CompilerParams(
            dimension_semantics=("parallel",)),
        input_output_aliases={1: 0},           # out reuses x2d's HBM buffer
        cost_estimate=pl.CostEstimate(
            flops=2 * R * R * hw_pad,
            transcendentals=0,
            bytes_accessed=2 * R * hw_pad * 4 + R * R * 4),
    )(bd, x2d)

    if hw_pad != HW:
        out2d = out2d[:, :HW]
    return out2d.reshape(B, C, H, W)


# ----------------------------------------------------------------------------
# Pure-JAX step-by-step Euler reference (same Python-float time grid).
# ----------------------------------------------------------------------------
def ode_solve_ref(x_nchw, t_start, t_end, steps, dt, w):
    ts = get_ts(t_start, t_end, steps, dt)
    x = x_nchw.astype(jnp.float32)
    wf = w.astype(jnp.float32)
    for k in range(len(ts) - 1):
        t_k = ts[k]
        dt_k = ts[k + 1] - ts[k]
        beta_k = BETA_MIN + t_k * (BETA_MAX - BETA_MIN)
        score = jnp.einsum('bchw,cd->bdhw', x, wf,
                           precision=jax.lax.Precision.HIGHEST)
        drift = -0.5 * beta_k * (x + score)
        x = x + dt_k * drift
    return x.astype(x_nchw.dtype)


if __name__ == "__main__":
    key = jax.random.PRNGKey(0)
    kx, kw = jax.random.split(key)

    B, C, H, W = 2, 4, 16, 16
    x = jax.random.normal(kx, (B, C, H, W), dtype=jnp.float32)
    w = 0.1 * jax.random.normal(kw, (C, C), dtype=jnp.float32)  # synthetic score net

    t_start, t_end, steps, dt = 1.0, 1e-3, 6, 0.1

    out = jax.block_until_ready(ode_solve(x, t_start, t_end, steps, dt, w))
    ref = ode_solve_ref(x, t_start, t_end, steps, dt, w)

    assert out.shape == x.shape and out.dtype == x.dtype
    assert jnp.allclose(out, ref, atol=1e-3, rtol=1e-3), float(jnp.max(jnp.abs(out - ref)))

    print("KERNEL_OK")
</pallas_src>

<mosaic_0001>
module attributes {stable_mosaic.version = 11 : i64} {
  func.func @_ode_mix_kernel(%arg0: i32, %arg1: memref<8x8xf32, #tpu.memory_space<vmem>>, %arg2: memref<8x128xf32, #tpu.memory_space<vmem>>, %arg3: memref<8x128xf32, #tpu.memory_space<vmem>>) attributes {dimension_semantics = [#tpu.dimension_semantics<parallel>], iteration_bounds = array<i64: 2>, scalar_prefetch = 0 : i64, scratch_operands = 0 : i64, tpu.core_type = #tpu.core_type<tc>, window_params = [{pipeline_mode = #tpu.pipeline_mode<synchronous>, transform_indices = @transform_0, window_bounds = array<i64: 8, 8>}, {transform_indices = @transform_1, window_bounds = array<i64: 8, 128>}, {transform_indices = @transform_2, window_bounds = array<i64: 8, 128>}]} {
    %c0 = arith.constant 0 : index
    %c0_0 = arith.constant 0 : index
    %0 = vector.load %arg1[%c0, %c0_0] : memref<8x8xf32, #tpu.memory_space<vmem>>, vector<8x8xf32>
    %c0_1 = arith.constant 0 : index
    %c0_2 = arith.constant 0 : index
    %1 = vector.load %arg2[%c0_1, %c0_2] : memref<8x128xf32, #tpu.memory_space<vmem>>, vector<8x128xf32>
    %cst = arith.constant dense<0.000000e+00> : vector<8x128xf32>
    %2 = tpu.matmul %0, %1, %cst {dimension_numbers = #tpu.dot_dimension_numbers<[1], [0], [0], [1], [0, 0, 1, 1], [], []>} : vector<8x8xf32>, vector<8x128xf32>, vector<8x128xf32> -> vector<8x128xf32>
    %c0_3 = arith.constant 0 : index
    %c0_4 = arith.constant 0 : index
    %3 = vector.load %arg3[%c0_3, %c0_4] : memref<8x128xf32, #tpu.memory_space<vmem>>, vector<8x128xf32>
    tpu.vector_store %arg3[%c0_3, %c0_4], %2 {strides = array<i32>} : memref<8x128xf32, #tpu.memory_space<vmem>>, vector<8x128xf32>,
    return
  }
  func.func @transform_0(%arg0: i32) -> (i32, i32) {
    %c0_i32 = arith.constant 0 : i32
    %c0_i32_0 = arith.constant 0 : i32
    %c0_i32_1 = arith.constant 0 : i32
    return %c0_i32, %c0_i32_0 : i32, i32
  }
  func.func @transform_1(%arg0: i32) -> (i32, i32) {
    %c0_i32 = arith.constant 0 : i32
    %c0_i32_0 = arith.constant 0 : i32
    return %c0_i32, %arg0 : i32, i32
  }
  func.func @transform_2(%arg0: i32) -> (i32, i32) {
    %c0_i32 = arith.constant 0 : i32
    %c0_i32_0 = arith.constant 0 : i32
    return %c0_i32, %arg0 : i32, i32
  }
}

</mosaic_0001>

<bundles_post_ra>
// kernel: tpu_custom_call.1
= control target key start
LH: loop header
LB: loop body
LE: loop exit
PB: predicated region body
PF: predicated region fallthrough
CT: control target
= control target key end

     0   :  { %7 = vsyncpa [#allocation3], 0  ;;  %s669_s0 = inlined_call_operand.vmem [shape: f32[8,8], index: 0, kind: input, shape index: {}]   ;;  %s670_s1 = inlined_call_operand.hbm [shape: f32[8,256], index: 1, kind: input, shape index: {}, may-alias: {1,2}]   ;;  %s671_s2 = inlined_call_operand.hbm [shape: f32[8,256], index: 2, kind: output, shape index: {}, may-alias: {1,2}]  }
   0x1   :  { %9 = vsyncpa [#allocation3 + $0x1], 0 }
   0x2   :  { %10 = vsyncpa [#allocation4], 0 }
   0x3   :  { %12 = vsyncpa [#allocation4 + $0x1], 0  ;;  %s505_s9 = smov 0   ;;  %s507_s10 = smov 0  }
   0x4   :  { %s509_s11 = smov 0   ;;  %s511_s12 = smov 0  }
   0x5 LB: > { %s526_s13 = sadd.s32 4294967295, %s484_s12   ;;  %s320_s14 = sadd.s32 4294967294, %s484_s12   ;;  %s484_s12 = sphi %s511_s12, %s686_s12   ;;  %s480_s11 = sphi %s509_s11, %s685_s11   ;;  %s476_s10 = sphi %s507_s10, %s684_s10   ;;  %s472_s9 = sphi %s505_s9, %s683_s9  }
   0x6   : > { %s530_s15 = sadd.s32 1, %s484_s12   ;;  %s46_s16 = sadd.s32 1, %s480_s11 }
   0x7   : > { %s43_s17 = ssub.s32 %s484_s12, %s530_s15  ;;  %p53_p0 = scmp.ne.s32.totalorder %s480_s11, %s476_s10 }
   0x8   : > { %p44_p1 = scmp.eq.s32.totalorder %s43_s17, 0  ;;  %p54_p2 = scmp.eq.s32.totalorder %s484_s12, 0 }
   0x9   : > { %p59_p3 = scmp.ne.s32.totalorder %s476_s10, %s472_s9  ;;  %p60_p4 = scmp.eq.s32.totalorder %s526_s13, 0 }
   0xa   : > { %s542_s18 = scalar_select %p44_p1, %s480_s11, %s46_s16  }
   0xb   : > { %p544_p5 = por %p54_p2, %p53_p0  ;;  %p548_p6 = por %p60_p4, %p59_p3 }
   0xc   : > { %p83_p7 = scmp.eq.s32.totalorder %s526_s13, 1  ;;  %p89_p8 = scmp.eq.s32.totalorder %s320_s14, 1 }
   0xd   : > { %p352_p10 = scmp.lt.s32.totalorder %s484_s12, 2  ;;  %s112_s23 = sand.u32 1, %s480_s11  }
   0xe   : > { %p555_p11 = por %p83_p7, %p53_p0  ;;  %p559_p12 = por %p89_p8, %p59_p3 }
   0xf   : > { %s324_s24 = sshll.u32 %s484_s12, 7  ;;  %s323_s25 = sshll.u32 %s112_s23, 3 }
  0x10   : > { %s675_s21 = scalar_select %p555_p11, 1, 0 }
  0x11   : > { %s676_s22 = scalar_select %p559_p12, 1, 0 }
  0x12   : > { %s568_s28 = scalar_lea.hbm %s670_s1, %s324_s24  ;;  %s116_s29 = scalar_lea.vmem [#allocation2], %s323_s25 }
  0x13   : > { %s123_s30 = sshll.u32 %s116_s29, 4  ;;  %p572_p13 = pnand %p352_p10, %p544_p5  ;;  %s576_s30 = int_to_ptr.vmem [resolvable:$true] %s123_s30 }
  0x14   : > { %s113_s4 = scalar_lea.sflag [#allocation3], %s112_s23  ;;  %s388_s5 = scalar_lea.hbm %s568_s28, 128 }
  0x15   : > { %p389_p2 = scmp.ne.s32.totalorder %s568_s28, %s388_s5  ;;  %p390_p3 = pneg %p572_p13 }
  0x16   : > { %s393_s8 = scalar_lea.hbm %s670_s1, 256  ;;  %p394_p5 = scmp.lt.u32.totalorder %s568_s28, %s670_s1 }
  0x17   : > { %p391_p4 = pnand %p390_p3, %p389_p2  ;;  %p395_p8 = scmp.lt.u32.totalorder %s393_s8, %s388_s5 }
  0x18   : > { %p397_p9 = scmp.lt.u32.totalorder %s388_s5, %s568_s28 }
  0x19   : > { %p392_p7 = pneg %p391_p4  ;;  %p396_p10 = por %p395_p8, %p394_p5 }
  0x1b   : > { %p398_p0 = por %p397_p9, %p396_p10 }
  0x1d   : > { %p399_p1 = pnand %p398_p0, %p392_p7 }
  0x1f   : > { %402 = shalt.err (!%p399_p1)
}
  0x20   : > { %s403_s17 = scalar_lea.vmem %s576_s30, 128  ;;  %s486_s19 = smov [#allocation2]  }
  0x21   : > { %p404_p2 = scmp.ne.s32.totalorder %s576_s30, %s403_s17  ;;  %s408_s23 = sshll.u32 %s486_s19, 4  ;;  %s409_s23 = int_to_ptr.vmem [resolvable:$false] %s408_s23 }
  0x22   : > { %s410_s24 = scalar_lea.vmem %s409_s23, 256  ;;  %p411_p11 = scmp.lt.s32.totalorder %s576_s30, %s409_s23 }
  0x23   : > { %p406_p4 = pnand %p404_p2, %p390_p3  ;;  %p412_p5 = scmp.lt.s32.totalorder %s410_s24, %s403_s17 }
  0x25   : > { %p407_p12 = pneg %p406_p4  ;;  %p413_p8 = por %p412_p5, %p411_p11 }
  0x27   : > { %p414_p9 = pnand %p413_p8, %p407_p12 }
  0x29   : > { %417 = shalt.err (!%p414_p9)
}
  0x2a   : > { %347 = dma.hbm_to_vmem [thread:$0]  (!%p572_p13), %s568_s28, 128, %s576_s30, %s113_s4  }
  0x2b   : > { %p678_p0 = scmp.lt.s32.totalorder %s484_s12, 3  ;;  %p679_p1 = scmp.ge.s32.totalorder %s484_s12, 1 }
  0x2d   : > { %p129_p3 = pnand %p679_p1, %p678_p0 }
  0x2e   : > { %s610_s25 = sand.u32 (!%p129_p3), 1, %s476_s10  }
  0x2f   : > { %132 = sbr.rel (%p129_p3) target bundleno = 284 (0x11c), region = 28  ;;  %s326_s26 = sshll.u32 (!%p129_p3), %s610_s25, 3 }
  0x30   : > { %s135_s27 = scalar_lea.sflag (!%p129_p3), [#allocation3], %s610_s25  ;;  %s138_s29 = scalar_lea.vmem (!%p129_p3), [#allocation2], %s326_s26 }
  0x36   : > { %463 = dma.done.wait (%p548_p6), %s135_s27, 128  }
  0x37   : > { %465 = vsyncadd (%p548_p6), %s135_s27, 4294967168  ;;  %v487_v0 = vmov 0.0   ;;  %vm488_vm0 = vmmov 0   ;;  %vm161_vm1 = vcmask 64512   ;;  %v160_v1 = vld [vmem:[%s138_s29] sm:$0xff]  ;;  %s158_s3 = scalar_lea.vmem [#allocation5], %s326_s26 }
  0x38   : > { %335 = vmatprep.subr.mxu0 %v487_v0  ;;  %337 = vmatprep.mubr.msk.f32.mxu0 %vm488_vm0, %v487_v0  ;;  %v159_v2 = vld [vmem:[%s669_s0] sm:$0xff]  ;;  %s250_s4 = sshll.u32 %s158_s3, 4  ;;  %s330_s5 = sshll.u32 %s526_s13, 7  ;;  %s622_s4 = int_to_ptr.vmem [resolvable:$true] %s250_s4 }
  0x39   : > { %336 = vmatpush3.msra.mxu0 %v160_v1  ;;  %s627_s7 = scalar_lea.hbm %s671_s2, %s330_s5  ;;  %s237_s8 = scalar_lea.sflag [#allocation4], %s610_s25 }
  0x3a   : > { %338 = vmatmul.mubr.msk.f32.vlgmr.msra.gmra.mrb[0].mxu0 %vm161_vm1, %v159_v2  ;;  %s418_s14 = scalar_lea.vmem %s622_s4, 128  ;;  %p680_p11 = scmp.ne.s32.totalorder %s675_s21, 0 }
  0x3b   : > { %p419_p6 = scmp.ne.s32.totalorder %s622_s4, %s418_s14  ;;  %s489_s13 = smov [#allocation5]  }
  0x3c   : > { %s422_s16 = sshll.u32 %s489_s13, 4  ;;  %s423_s16 = int_to_ptr.vmem [resolvable:$false] %s422_s16 }
  0x3d   : > { %p420_p12 = pnand %p419_p6, %p680_p11  ;;  %s424_s17 = scalar_lea.vmem %s423_s16, 256 }
  0x3e   : > { %p425_p7 = scmp.lt.s32.totalorder %s622_s4, %s423_s16  ;;  %p426_p10 = scmp.lt.s32.totalorder %s424_s17, %s418_s14 }
  0x3f   : > { %p421_p13 = pneg %p420_p12 }
  0x40   : > { %p427_p2 = por %p426_p10, %p425_p7 }
  0x42   : > { %p428_p4 = pnand %p427_p2, %p421_p13 }
 0x10d   : > { %v231_v3 = vpop.f32.mrb[0].mxu0 }
 0x10e   : > { %235 = vst [vmem:[%s158_s3] sm:$0xff] %v231_v3  ;;  %v339_v4 = vpop.f32.mrb[1].mxu0 }
 0x10f   : > { %431 = shalt.err (!%p428_p4)
}
 0x110   : > { %s432_s19 = scalar_lea.hbm %s627_s7, 128  ;;  %s436_s25 = scalar_lea.hbm %s671_s2, 256 }
 0x111   : > { %p433_p5 = scmp.ne.s32.totalorder %s627_s7, %s432_s19  ;;  %p437_p0 = scmp.lt.u32.totalorder %s627_s7, %s671_s2 }
 0x112   : > { %p438_p1 = scmp.lt.u32.totalorder %s436_s25, %s432_s19  ;;  %p440_p6 = scmp.lt.u32.totalorder %s432_s19, %s627_s7 }
 0x113   : > { %p434_p8 = pnand %p433_p5, %p680_p11 }
 0x114   : > { %p439_p3 = por %p438_p1, %p437_p0 }
 0x115   : > { %p435_p9 = pneg %p434_p8 }
 0x116   : > { %p441_p12 = por %p440_p6, %p439_p3 }
 0x118   : > { %p442_p13 = pnand %p441_p12, %p435_p9 }
 0x11a   : > { %445 = shalt.err (!%p442_p13)
}
 0x11b   : > { %342 = dma.vmem_to_hbm [thread:$0]  (%p680_p11), %s622_s4, 128, %s627_s7, %s237_s8  }
 0x11c PF: > { %s262_s29 = sand.u32 1, %s472_s9   ;;  %p681_p7 = scmp.ne.s32.totalorder %s676_s22, 0 }
 0x11d   : > { %p682_p10 = scmp.ge.s32.totalorder %s484_s12, 2  ;;  %s263_s28 = scalar_lea.sflag [#allocation4], %s262_s29 }
 0x11f   : > { %p349_p2 = pnand %p682_p10, %p681_p7 }
 0x121   : > { %467 = dma.done.wait (!%p349_p2), %s263_s28, 128  }
 0x122   : > { %469 = vsyncadd (!%p349_p2), %s263_s28, 4294967168  ;;  %p15_p4 = scmp.ge.s32.totalorder %s530_s15, 4   ;;  %s683_s9 = smov %s476_s10 }
 0x123   : > { %s684_s10 = smov %s480_s11  ;;  %s685_s11 = smov %s542_s18 }
 0x124   : > { %s686_s12 = smov %s530_s15  ;;  %17 = sbr.rel (!%p15_p4) target bundleno = 5 (0x5), region = 73 }
 0x12b   :  { %268 = vsyncpa [#allocation3], 1 }
 0x12c   :  { %270 = vsyncpa [#allocation3 + $0x1], 1 }
 0x12d   :  { %271 = vsyncpa [#allocation4], 1 }
 0x12e   :  { %273 = vsyncpa [#allocation4 + $0x1], 1 }

</bundles_post_ra>
